<compile_context>
chip_gen: v7x
topology: tpu7x:2x2x1
jax: 0.10.0
libtpu: 0.0.40
codegen_flags: <defaults>
</compile_context>

<pallas_src>
import math
import functools

import jax
import jax.numpy as jnp
from jax.experimental import pallas as pl
from jax.experimental.pallas import tpu as pltpu

EPS = 1e-5        # nn.InstanceNorm2d default eps
_LANE = 128       # TPU vreg lane count


def _sublane_for(dtype):
    # Native sublane tile: 8 rows for 32-bit, 16 for bf16, 32 for int8/fp8.
    return max(8, 32 // jnp.dtype(dtype).itemsize)


def _vmem_capacity_bytes():
    try:
        return int(pltpu.get_tpu_info().vmem_capacity_bytes)
    except Exception:
        return 64 * 1024 * 1024          # conservative: v7x per-TC physical VMEM


# ---------------------------------------------------------------------------
# Kernel 1: fused equalized-LR ("weighted scale") linear for style scale+bias.
#   out[N, 2C] = w[N, w_dim] @ fused_weight[w_dim, 2C] + fused_bias[1, 2C]
# sqrt(2/w_dim) and the scale/bias weight concat are folded into fused_weight
# once at init, so the forward pass is a single tiny MXU matmul.
# ---------------------------------------------------------------------------
def style_linear_kernel(w_ref, weight_ref, bias_ref, out_ref):
    acc = jnp.dot(w_ref[...].astype(jnp.float32),
                  weight_ref[...].astype(jnp.float32),
                  preferred_element_type=jnp.float32)
    out_ref[...] = (acc + bias_ref[...].astype(jnp.float32)).astype(out_ref.dtype)


def style_projection(w, fused_weight, fused_bias):
    """w: (N, w_dim) -> (N, 2C) f32 = [scale | bias]."""
    N, w_dim = w.shape
    two_c = fused_weight.shape[1]
    return pl.pallas_call(
        style_linear_kernel,
        out_shape=jax.ShapeDtypeStruct((N, two_c), jnp.float32),
        grid=(1,),
        in_specs=[
            pl.BlockSpec((N, w_dim), lambda i: (0, 0)),
            pl.BlockSpec((w_dim, two_c), lambda i: (0, 0)),
            pl.BlockSpec((1, two_c), lambda i: (0, 0)),
        ],
        out_specs=pl.BlockSpec((N, two_c), lambda i: (0, 0)),
    )(w, fused_weight, fused_bias)


# ---------------------------------------------------------------------------
# Kernel 2a: single-pass fused instance-norm + AdaIN affine (whole row in VMEM).
#   mean = sum(x)/HW ; var = sum(x^2)/HW - mean^2   (biased, as PyTorch IN)
#   a = s * rsqrt(var + eps) ; c = b - mean * a ; out = x * a + c
# ---------------------------------------------------------------------------
def adain_fused_kernel(x_ref, scale_ref, bias_ref, out_ref, *, inv_count):
    x = x_ref[...].astype(jnp.float32)                 # (rows_tile, HW)
    s = scale_ref[...].astype(jnp.float32)             # (rows_tile, 1)
    b = bias_ref[...].astype(jnp.float32)              # (rows_tile, 1)

    sum_x = jnp.sum(x, axis=-1, keepdims=True)
    sum_x2 = jnp.sum(x * x, axis=-1, keepdims=True)
    mean = sum_x * inv_count
    var = jnp.maximum(sum_x2 * inv_count - mean * mean, 0.0)

    a = s * jax.lax.rsqrt(var + EPS)                   # hoisted per-row affine
    c = b - mean * a
    out_ref[...] = (x * a + c).astype(out_ref.dtype)


def adain_fused(x_flat, scale_col, bias_col, *, rows_tile, vmem_cap):
    NC, HW = x_flat.shape
    itemsize = jnp.dtype(x_flat.dtype).itemsize
    grid = (pl.cdiv(NC, rows_tile),)

    block_bytes = rows_tile * HW * itemsize
    # 2x in + 2x out double buffers for the x block + 2x each lane-padded
    # (rows_tile, 1) scale/bias block (each costs rows_tile * 512 B of VMEM).
    footprint = 4 * block_bytes + 4 * rows_tile * _LANE * 4
    vmem_limit = int(min(vmem_cap * 3 // 4, max(32 << 20, footprint + (4 << 20))))

    kernel = functools.partial(adain_fused_kernel, inv_count=1.0 / float(HW))
    return pl.pallas_call(
        kernel,
        out_shape=jax.ShapeDtypeStruct((NC, HW), x_flat.dtype),
        grid=grid,
        in_specs=[
            pl.BlockSpec((rows_tile, HW), lambda i: (i, 0)),
            pl.BlockSpec((rows_tile, 1), lambda i: (i, 0)),   # per-step style scale
            pl.BlockSpec((rows_tile, 1), lambda i: (i, 0)),   # per-step style bias
        ],
        out_specs=pl.BlockSpec((rows_tile, HW), lambda i: (i, 0)),
        compiler_params=pltpu.CompilerParams(
            dimension_semantics=("parallel",),
            vmem_limit_bytes=vmem_limit,
        ),
    )(x_flat, scale_col, bias_col)


# ---------------------------------------------------------------------------
# Kernel 2b/2c: chunked path for feature maps too large to keep a whole row
# tile resident (v7x has only 64 MiB VMEM).  2-D grid: rows "parallel",
# HW chunks "arbitrary".  Pass 1 accumulates sum / sumsq into VMEM scratch and
# emits per-row (a, c); pass 2 applies out = x * a + c.
# ---------------------------------------------------------------------------
def adain_stats_kernel(x_ref, scale_ref, bias_ref, a_ref, c_ref,
                       sum_ref, sumsq_ref, *, hw_true, hw_chunk):
    j = pl.program_id(1)

    @pl.when(j == 0)
    def _():
        sum_ref[...] = jnp.zeros_like(sum_ref)
        sumsq_ref[...] = jnp.zeros_like(sumsq_ref)

    x = x_ref[...].astype(jnp.float32)
    if hw_true % hw_chunk != 0:
        # Mask the partial tail chunk so garbage lanes don't pollute the stats.
        col = jax.lax.broadcasted_iota(jnp.int32, x.shape, 1)
        x = jnp.where(col < (hw_true - j * hw_chunk), x, 0.0)

    sum_ref[...] += jnp.sum(x, axis=-1, keepdims=True)
    sumsq_ref[...] += jnp.sum(x * x, axis=-1, keepdims=True)

    @pl.when(j == pl.num_programs(1) - 1)
    def _():
        inv_count = 1.0 / float(hw_true)
        mean = sum_ref[...] * inv_count
        var = jnp.maximum(sumsq_ref[...] * inv_count - mean * mean, 0.0)
        a = scale_ref[...].astype(jnp.float32) * jax.lax.rsqrt(var + EPS)
        a_ref[...] = a
        c_ref[...] = bias_ref[...].astype(jnp.float32) - mean * a


def adain_apply_kernel(x_ref, a_ref, c_ref, out_ref):
    out_ref[...] = (x_ref[...].astype(jnp.float32) * a_ref[...]
                    + c_ref[...]).astype(out_ref.dtype)


def adain_chunked(x_flat, scale_col, bias_col, *, rows_tile, hw_chunk, vmem_cap):
    NC, HW = x_flat.shape
    itemsize = jnp.dtype(x_flat.dtype).itemsize
    grid = (pl.cdiv(NC, rows_tile), pl.cdiv(HW, hw_chunk))

    block_bytes = rows_tile * hw_chunk * itemsize
    col_bytes = rows_tile * _LANE * 4        # lane-padded (rows_tile, 1) block
    stats_limit = int(min(vmem_cap * 3 // 4,
                          max(32 << 20, 2 * block_bytes + 10 * col_bytes + (4 << 20))))
    apply_limit = int(min(vmem_cap * 3 // 4,
                          max(32 << 20, 4 * block_bytes + 4 * col_bytes + (4 << 20))))

    stats_kernel = functools.partial(adain_stats_kernel, hw_true=HW, hw_chunk=hw_chunk)
    a_col, c_col = pl.pallas_call(
        stats_kernel,
        out_shape=(jax.ShapeDtypeStruct((NC, 1), jnp.float32),
                   jax.ShapeDtypeStruct((NC, 1), jnp.float32)),
        grid=grid,
        in_specs=[
            pl.BlockSpec((rows_tile, hw_chunk), lambda i, j: (i, j)),
            pl.BlockSpec((rows_tile, 1), lambda i, j: (i, 0)),
            pl.BlockSpec((rows_tile, 1), lambda i, j: (i, 0)),
        ],
        out_specs=(pl.BlockSpec((rows_tile, 1), lambda i, j: (i, 0)),
                   pl.BlockSpec((rows_tile, 1), lambda i, j: (i, 0))),
        scratch_shapes=[pltpu.VMEM((rows_tile, 1), jnp.float32),
                        pltpu.VMEM((rows_tile, 1), jnp.float32)],
        compiler_params=pltpu.CompilerParams(
            dimension_semantics=("parallel", "arbitrary"),
            vmem_limit_bytes=stats_limit,
        ),
    )(x_flat, scale_col, bias_col)

    return pl.pallas_call(
        adain_apply_kernel,
        out_shape=jax.ShapeDtypeStruct((NC, HW), x_flat.dtype),
        grid=grid,
        in_specs=[
            pl.BlockSpec((rows_tile, hw_chunk), lambda i, j: (i, j)),
            pl.BlockSpec((rows_tile, 1), lambda i, j: (i, 0)),
            pl.BlockSpec((rows_tile, 1), lambda i, j: (i, 0)),
        ],
        out_specs=pl.BlockSpec((rows_tile, hw_chunk), lambda i, j: (i, j)),
        compiler_params=pltpu.CompilerParams(
            dimension_semantics=("parallel", "parallel"),
            vmem_limit_bytes=apply_limit,
        ),
    )(x_flat, a_col, c_col)


# ---------------------------------------------------------------------------
# Tiling planner + module wrapper (glue in plain JAX: reshapes only).
# ---------------------------------------------------------------------------
def _plan_single_pass_rows(NC, HW, dtype, budget, target):
    sublane = _sublane_for(dtype)
    if NC <= sublane:
        return NC                          # one full-extent block (always legal)
    itemsize = jnp.dtype(dtype).itemsize
    row_bytes = HW * itemsize
    # VMEM per row of one grid step, double-buffered:
    #   x in + out (2x each) + lane-padded (rows,1) scale/bias blocks (2x each).
    per_row = 4 * row_bytes + 4 * _LANE * 4
    rows = min(budget // per_row, max(1, target // row_bytes))
    rows = max(sublane, (rows // sublane) * sublane)
    rows = min(rows, (NC // sublane) * sublane)
    # Prefer >= 4 grid steps (>= 2 per TensorCore on dual-core v7x) so each
    # core still overlaps DMA with compute.
    while rows > sublane and pl.cdiv(NC, rows) < 4:
        rows = max(sublane, ((rows // 2) // sublane) * sublane)
    return int(rows)


def ada_in_forward(x, w, fused_weight, fused_bias, *, rows_tile=None,
                   force_chunked=False, hw_chunk=None):
    """x: (N, C, H, W); w: (N, w_dim); fused_* from fuse_style_params()."""
    N, C, H, W = x.shape
    NC, HW = N * C, H * W

    # Style scale / bias via ONE fused weighted-scale linear kernel -> (N, 2C).
    style = style_projection(w, fused_weight, fused_bias)
    scale_col = style[:, :C].reshape(NC, 1)
    bias_col = style[:, C:].reshape(NC, 1)

    x_flat = x.reshape(NC, HW)
    dtype = x_flat.dtype
    itemsize = jnp.dtype(dtype).itemsize
    sublane = _sublane_for(dtype)
    vmem_cap = _vmem_capacity_bytes()
    budget = min(vmem_cap * 5 // 8, 40 * 1024 * 1024)   # pipelined-buffer budget
    target = 8 * 1024 * 1024                            # ~8 MiB blocks amortize ~0.35us/step

    row_bytes = HW * itemsize
    min_rows = NC if NC <= sublane else sublane
    use_chunked = force_chunked or (4 * min_rows * row_bytes > budget)

    if use_chunked and hw_chunk is None:
        hw_chunk = max(_LANE, (min(target // (min_rows * itemsize), HW) // _LANE) * _LANE)

    if use_chunked and hw_chunk < HW:
        out_flat = adain_chunked(x_flat, scale_col, bias_col,
                                 rows_tile=int(min_rows), hw_chunk=int(hw_chunk),
                                 vmem_cap=vmem_cap)
    else:
        if rows_tile is None:
            rows_tile = _plan_single_pass_rows(NC, HW, dtype, budget, target)
        out_flat = adain_fused(x_flat, scale_col, bias_col,
                               rows_tile=int(rows_tile), vmem_cap=vmem_cap)
    return out_flat.reshape(N, C, H, W)


# ---------------------------------------------------------------------------
# Parameters + pure-JAX reference.
# ---------------------------------------------------------------------------
def init_params(key, channels, w_dim):
    # Equalized-LR layers: weight ~ N(0, 1), bias = 0 (as in the PyTorch code).
    k1, k2 = jax.random.split(key)
    return {
        "scale_w": jax.random.normal(k1, (w_dim, channels), jnp.float32),
        "scale_b": jnp.zeros((channels,), jnp.float32),
        "bias_w": jax.random.normal(k2, (w_dim, channels), jnp.float32),
        "bias_b": jnp.zeros((channels,), jnp.float32),
    }


def fuse_style_params(params):
    """One-time prep: concat scale/bias projections and fold in sqrt(2/w_dim)."""
    w_dim = params["scale_w"].shape[0]
    ws = math.sqrt(2.0 / w_dim)
    fused_weight = (jnp.concatenate([params["scale_w"], params["bias_w"]], axis=1)
                    .astype(jnp.float32) * ws)
    fused_bias = jnp.concatenate([params["scale_b"], params["bias_b"]]
                                 ).reshape(1, -1).astype(jnp.float32)
    return fused_weight, fused_bias


def ada_in_reference(x, w, params):
    """Pure-JAX reference matching the PyTorch module."""
    ws = math.sqrt(2.0 / w.shape[1])
    style_scale = (w * ws) @ params["scale_w"] + params["scale_b"]
    style_bias = (w * ws) @ params["bias_w"] + params["bias_b"]
    mean = jnp.mean(x, axis=(2, 3), keepdims=True)
    var = jnp.mean((x - mean) ** 2, axis=(2, 3), keepdims=True)
    x_norm = (x - mean) * jax.lax.rsqrt(var + EPS)
    return style_scale[:, :, None, None] * x_norm + style_bias[:, :, None, None]


if __name__ == "__main__":
    def check(N, C, H, W, W_DIM, *, force_chunked=False, hw_chunk=None):
        key = jax.random.PRNGKey(0)
        kx, kw, kp = jax.random.split(key, 3)
        x = jax.random.normal(kx, (N, C, H, W), jnp.float32)
        w = jax.random.normal(kw, (N, W_DIM), jnp.float32)
        params = init_params(kp, C, W_DIM)
        fused_weight, fused_bias = fuse_style_params(params)
        out = jax.block_until_ready(
            ada_in_forward(x, w, fused_weight, fused_bias,
                           force_chunked=force_chunked, hw_chunk=hw_chunk))
        ref = ada_in_reference(x, w, params)
        assert out.shape == x.shape
        assert jnp.allclose(out, ref, atol=1e-4, rtol=1e-4), \
            f"mismatch vs reference for shape {(N, C, H, W)}"

    # Primary small case (aligned dims, single-pass fused path).
    check(2, 4, 16, 16, 8)
    # Unaligned dims: partial last row-block + masked (<128-lane) tail stores.
    check(2, 3, 5, 7, 8)
    # Exercise the chunked large-HW path (2-D grid, stats accumulators,
    # masked partial HW tail chunk) at a small size.
    check(2, 4, 16, 24, 8, force_chunked=True, hw_chunk=256)

    print("KERNEL_OK")
</pallas_src>

<mosaic_0001>
module attributes {stable_mosaic.version = 11 : i64} {
  func.func @style_linear_kernel(%arg0: i32, %arg1: memref<2x8xf32, #tpu.memory_space<vmem>>, %arg2: memref<8x8xf32, #tpu.memory_space<vmem>>, %arg3: memref<1x8xf32, #tpu.memory_space<vmem>>, %arg4: memref<2x8xf32, #tpu.memory_space<vmem>>) attributes {dimension_semantics = [#tpu.dimension_semantics<arbitrary>], iteration_bounds = array<i64: 1>, scalar_prefetch = 0 : i64, scratch_operands = 0 : i64, tpu.core_type = #tpu.core_type<tc>, window_params = [{pipeline_mode = #tpu.pipeline_mode<synchronous>, transform_indices = @transform_0, window_bounds = array<i64: 2, 8>}, {pipeline_mode = #tpu.pipeline_mode<synchronous>, transform_indices = @transform_1, window_bounds = array<i64: 8, 8>}, {pipeline_mode = #tpu.pipeline_mode<synchronous>, transform_indices = @transform_2, window_bounds = array<i64: 1, 8>}, {pipeline_mode = #tpu.pipeline_mode<synchronous>, transform_indices = @transform_3, window_bounds = array<i64: 2, 8>}]} {
    %c0 = arith.constant 0 : index
    %c0_0 = arith.constant 0 : index
    %0 = vector.load %arg1[%c0, %c0_0] : memref<2x8xf32, #tpu.memory_space<vmem>>, vector<2x8xf32>
    %c0_1 = arith.constant 0 : index
    %c0_2 = arith.constant 0 : index
    %1 = vector.load %arg2[%c0_1, %c0_2] : memref<8x8xf32, #tpu.memory_space<vmem>>, vector<8x8xf32>
    %cst = arith.constant dense<0.000000e+00> : vector<2x8xf32>
    %2 = tpu.matmul %0, %1, %cst {dimension_numbers = #tpu.dot_dimension_numbers<[1], [0], [0], [1], [0, 0, 1, 1], [], []>} : vector<2x8xf32>, vector<8x8xf32>, vector<2x8xf32> -> vector<2x8xf32>
    %c0_3 = arith.constant 0 : index
    %c0_4 = arith.constant 0 : index
    %3 = vector.load %arg3[%c0_3, %c0_4] : memref<1x8xf32, #tpu.memory_space<vmem>>, vector<1x8xf32>
    %4 = vector.broadcast %3 : vector<1x8xf32> to vector<2x8xf32>
    %5 = arith.addf %2, %4 : vector<2x8xf32>
    %c0_5 = arith.constant 0 : index
    %c0_6 = arith.constant 0 : index
    %6 = vector.load %arg4[%c0_5, %c0_6] : memref<2x8xf32, #tpu.memory_space<vmem>>, vector<2x8xf32>
    tpu.vector_store %arg4[%c0_5, %c0_6], %5 {strides = array<i32>} : memref<2x8xf32, #tpu.memory_space<vmem>>, vector<2x8xf32>,
    return
  }
  func.func @transform_0(%arg0: i32) -> (i32, i32) {
    %c0_i32 = arith.constant 0 : i32
    %c0_i32_0 = arith.constant 0 : i32
    %c0_i32_1 = arith.constant 0 : i32
    return %c0_i32, %c0_i32_0 : i32, i32
  }
  func.func @transform_1(%arg0: i32) -> (i32, i32) {
    %c0_i32 = arith.constant 0 : i32
    %c0_i32_0 = arith.constant 0 : i32
    %c0_i32_1 = arith.constant 0 : i32
    return %c0_i32, %c0_i32_0 : i32, i32
  }
  func.func @transform_2(%arg0: i32) -> (i32, i32) {
    %c0_i32 = arith.constant 0 : i32
    %c0_i32_0 = arith.constant 0 : i32
    %c0_i32_1 = arith.constant 0 : i32
    return %c0_i32, %c0_i32_0 : i32, i32
  }
  func.func @transform_3(%arg0: i32) -> (i32, i32) {
    %c0_i32 = arith.constant 0 : i32
    %c0_i32_0 = arith.constant 0 : i32
    %c0_i32_1 = arith.constant 0 : i32
    return %c0_i32, %c0_i32_0 : i32, i32
  }
}

</mosaic_0001>

<bundles_post_ra>
// kernel: tpu_custom_call.1
= control target key start
LH: loop header
LB: loop body
LE: loop exit
PB: predicated region body
PF: predicated region fallthrough
CT: control target
= control target key end

     0   :  { %8 = vsyncpa [#allocation3], 0  ;;  %s290_s0 = inlined_call_operand.hbm [shape: f32[2,8], index: 0, kind: input, shape index: {}]   ;;  %s291_s1 = inlined_call_operand.hbm [shape: f32[8,8], index: 1, kind: input, shape index: {}]   ;;  %s292_s2 = inlined_call_operand.vmem [shape: f32[1,8], index: 2, kind: input, shape index: {}]   ;;  %s293_s3 = inlined_call_operand.hbm [shape: f32[2,8], index: 3, kind: output, shape index: {}]  }
   0x1   :  { %9 = vsyncpa [#allocation6], 0 }
   0x2   :  { %10 = vsyncpa [#allocation4], 0  ;;  %s226_s12 = smov [#allocation2]   ;;  %s227_s14 = smov [#allocation5]  }
   0x3   :  { %s17_s13 = sshll.u32 %s226_s12, 4  ;;  %s27_s15 = sshll.u32 %s227_s14, 4  ;;  %s18_s13 = int_to_ptr.vmem [resolvable:$true] %s17_s13  ;;  %s28_s15 = int_to_ptr.vmem [resolvable:$true] %s27_s15 }
   0x4   :  { %s154_s18 = scalar_lea.hbm %s290_s0, 32 }
   0x5   :  { %p155_p0 = scmp.ne.s32.totalorder %s290_s0, %s154_s18  ;;  %p158_p1 = scmp.lt.u32.totalorder %s154_s18, %s290_s0 }
   0x7   :  { %p160_p2 = pnand %p158_p1, %p155_p0 }
   0x9   :  { %163 = shalt.err (!%p160_p2)
}
   0xa   :  { %s164_s23 = scalar_lea.vmem %s18_s13, 32  ;;  %p169_p4 = scmp.lt.s32.totalorder %s18_s13, %s18_s13 }
   0xb   :  { %p165_p3 = scmp.ne.s32.totalorder %s18_s13, %s164_s23  ;;  %p170_p5 = scmp.lt.s32.totalorder %s164_s23, %s164_s23 }
   0xd   :  { %p171_p6 = por %p170_p5, %p169_p4 }
   0xf   :  { %p172_p7 = pnand %p171_p6, %p165_p3 }
  0x11   :  { %175 = shalt.err (!%p172_p7)
}
  0x12   :  { %20 = dma.hbm_to_vmem [thread:$0]  %s290_s0, 32, %s18_s13, [#allocation3]  }
  0x13   :  { %s176_s28 = scalar_lea.hbm %s291_s1, 128 }
  0x14   :  { %p177_p8 = scmp.ne.s32.totalorder %s291_s1, %s176_s28  ;;  %p180_p9 = scmp.lt.u32.totalorder %s176_s28, %s291_s1 }
  0x16   :  { %p182_p10 = pnand %p180_p9, %p177_p8 }
  0x18   :  { %185 = shalt.err (!%p182_p10)
}
  0x19   :  { %s186_s6 = scalar_lea.vmem %s28_s15, 128  ;;  %p191_p12 = scmp.lt.s32.totalorder %s28_s15, %s28_s15 }
  0x1a   :  { %p187_p11 = scmp.ne.s32.totalorder %s28_s15, %s186_s6  ;;  %p192_p13 = scmp.lt.s32.totalorder %s186_s6, %s186_s6 }
  0x1c   :  { %p193_p0 = por %p192_p13, %p191_p12 }
  0x1e   :  { %p194_p1 = pnand %p193_p0, %p187_p11 }
  0x20   :  { %197 = shalt.err (!%p194_p1)
}
  0x21   :  { %30 = dma.hbm_to_vmem [thread:$0]  %s291_s1, 128, %s28_s15, [#allocation6]  }
  0x22   :  { %220 = dma.done.wait [#allocation3], 32  }
  0x23   :  { %221 = vsyncadd [#allocation3], 4294967264 }
  0x24   :  { %222 = dma.done.wait [#allocation6], 128  }
  0x25   :  { %223 = vsyncadd [#allocation6], 4294967168  ;;  %v228_v0 = vmov 0.0   ;;  %vm229_vm0 = vmmov 0   ;;  %vm48_vm1 = vcmask 64512   ;;  %v40_v1 = vld [vmem:[#allocation5] sm:$0xff] }
  0x26   :  { %144 = vmatprep.subr.mxu0 %v228_v0  ;;  %146 = vmatprep.mubr.msk.f32.mxu0 %vm229_vm0, %v228_v0  ;;  %v39_v2 = vld [vmem:[#allocation2] sm:$0x3]  ;;  %s230_s10 = smov [#allocation7]   ;;  %vm122_vm2 = vcmask 58368  }
  0x27   :  { %145 = vmatpush3.msra.mxu0 %v40_v1  ;;  %v140_v3 = vld [vmem:[%s292_s2] ss:$0 sm:$0xff]  ;;  %s130_s11 = sshll.u32 %s230_s10, 4  ;;  %s131_s11 = int_to_ptr.vmem [resolvable:$true] %s130_s11 }
  0x28   :  { %147 = vmatmul.mubr.msk.f32.vlgmr.msra.gmra.mrb[0].mxu0 %vm48_vm1, %v39_v2  ;;  %s198_s1 = scalar_lea.vmem %s131_s11, 32  ;;  %p203_p3 = scmp.lt.s32.totalorder %s131_s11, %s131_s11 }
  0x29   :  { %p199_p2 = scmp.ne.s32.totalorder %s131_s11, %s198_s1  ;;  %p204_p4 = scmp.lt.s32.totalorder %s198_s1, %s198_s1 }
  0x2b   :  { %p205_p5 = por %p204_p4, %p203_p3 }
  0x2d   :  { %p206_p6 = pnand %p205_p5, %p199_p2 }
  0xfb   :  { %v118_v4 = vpop.f32.mrb[0].mxu0 }
  0xfc   :  { %v119_v5 = vadd.f32 %v140_v3, %v118_v4  ;;  %v148_v6 = vpop.f32.mrb[1].mxu0 }
  0xfe   :  { %123 = vst.msk [vmem:[#allocation7] sm:$0x3] %vm122_vm2, %v119_v5 }
  0xff   :  { %209 = shalt.err (!%p206_p6)
}
 0x100   :  { %s210_s14 = scalar_lea.hbm %s293_s3, 32 }
 0x101   :  { %p211_p7 = scmp.ne.s32.totalorder %s293_s3, %s210_s14  ;;  %p214_p8 = scmp.lt.u32.totalorder %s210_s14, %s293_s3 }
 0x103   :  { %p216_p9 = pnand %p214_p8, %p211_p7 }
 0x105   :  { %219 = shalt.err (!%p216_p9)
}
 0x106   :  { %133 = dma.vmem_to_hbm [thread:$0]  %s131_s11, 32, %s293_s3, [#allocation4]  }
 0x107   :  { %224 = dma.done.wait [#allocation4], 32  }
 0x108   :  { %225 = vsyncadd [#allocation4], 4294967264 }
 0x109   :  { %137 = vsyncpa [#allocation3], 1 }
 0x10a   :  { %138 = vsyncpa [#allocation6], 1 }
 0x10b   :  { %139 = vsyncpa [#allocation4], 1 }

</bundles_post_ra>
